<compile_context>
chip_gen: v6e
topology: v6e:2x2x1
jax: 0.10.0
libtpu: 0.0.40
codegen_flags: <defaults>
</compile_context>

<pallas_src>
import functools

import numpy as np
import jax
import jax.numpy as jnp
from jax.experimental import pallas as pl
from jax.experimental.pallas import tpu as pltpu


# --------------------------------------------------------------------------------------
# Kernel body: one (row tile j, MC sample i) step.
#   phi_ref   : (TILE_N, K)             resident across the inner mc sweep (shared phi)
#   mu_ref    : (K, out_dim)            resident
#   sigma_ref : (K, out_dim)            resident (exp already applied in the wrapper)
#   eps_ref   : (mc, K, out_dim) resident  OR  (K, out_dim) streamed per MC sample
#   out_ref   : (TILE_N, out_dim)       streamed (lane-dense last dim)
# --------------------------------------------------------------------------------------
def _rff_linear_kernel(phi_ref, mu_ref, sigma_ref, eps_ref, out_ref, *,
                       compute_dtype, eps_resident):
    if eps_resident:
        eps = eps_ref[pl.program_id(1)]          # dynamic leading-axis pick of the resident slab
    else:
        eps = eps_ref[...]
    # Reparameterized weights for this MC sample (pure VPU FMA; transcendental hoisted out).
    w_q = mu_ref[...] + sigma_ref[...] * eps
    lhs = phi_ref[...].astype(compute_dtype)
    rhs = w_q.astype(compute_dtype)
    acc = jnp.dot(lhs, rhs, preferred_element_type=jnp.float32)   # MXU, f32 accumulate
    out_ref[...] = acc.astype(out_ref.dtype)


def _vmem_capacity_bytes():
    try:
        return int(pltpu.get_tpu_info().vmem_capacity_bytes)
    except Exception:
        return 64 * 1024 * 1024     # conservative fallback (v7x per-TensorCore VMEM)


def _choose_tile_n(n_total, k, out_dim, resident_bytes, in_itemsize, out_itemsize,
                   tile_budget_bytes):
    """Largest sublane-aligned row tile whose streamed traffic fits the VMEM budget."""
    budget = max(tile_budget_bytes - resident_bytes, 1 << 20)
    # phi + out double-buffered, plus the f32 accumulator tile.
    per_row = 2 * (k * in_itemsize + out_dim * out_itemsize) + out_dim * 4
    t = budget // per_row
    t = int(min(max(t, 8), 1024))                        # 512-1024 rows ~ 85%+ of roofline
    t = max(8, (t // 8) * 8)                             # sublane (8) alignment
    n_ceil = max(8, -(-n_total // 8) * 8)
    return min(t, n_ceil)


# --------------------------------------------------------------------------------------
# Wrapper: torch.matmul broadcast semantics + tiling / padding glue.
# --------------------------------------------------------------------------------------
def rff_linear_forward(phi, w_mu, w_logsigma, w_eps, *,
                       compute_dtype=jnp.float32, out_dtype=jnp.float32,
                       tile_n=None, interpret=False):
    mc, k, out_dim = w_eps.shape
    assert w_mu.shape == (k, out_dim) and w_logsigma.shape == (k, out_dim)

    # MC-invariant transcendental hoisted out of the kernel (keep EUP off the hot path).
    w_mu_f = w_mu.astype(jnp.float32)
    w_sigma = jnp.exp(0.5 * w_logsigma.astype(jnp.float32))
    w_eps_f = w_eps.astype(jnp.float32)

    # Normalize phi to a shared (N_total, K) slab or a per-MC (mc, N_total, K) slab.
    # Leading broadcast dims fold into N_total (exact: W_q broadcasts across them).
    if phi.ndim == 2:                                    # (N, K) @ (mc,1,K,out) -> (mc,1,N,out)
        shared, b_dim = True, 1
        phi_flat = phi
    elif phi.ndim == 3:                                  # (B, N, K) -> (mc, B, N, out)
        shared, b_dim = True, phi.shape[0]
        phi_flat = phi.reshape(-1, k)
    elif phi.ndim == 4 and phi.shape[0] == 1:            # (1, B, N, K) -> (mc, B, N, out)
        shared, b_dim = True, phi.shape[1]
        phi_flat = phi.reshape(-1, k)
    else:                                                # (mc, B, N, K) -> (mc, B, N, out)
        assert phi.ndim == 4 and phi.shape[0] == mc and phi.shape[-1] == k
        shared, b_dim = False, phi.shape[1]
        phi_flat = phi.reshape(mc, -1, k)
    n_total = phi_flat.shape[-2]

    # VMEM budget (v7x: 64 MiB, v5e/v6e: 128 MiB -> different limits & tiles).
    vmem_cap = _vmem_capacity_bytes()
    vmem_limit = int(min(max(int(0.75 * vmem_cap), 32 << 20), 96 << 20))
    in_itemsize = np.dtype(phi_flat.dtype).itemsize
    out_itemsize = np.dtype(out_dtype).itemsize

    # Keep the whole eps slab resident when it is small (eps DMA'd once for the kernel).
    eps_slab_bytes = mc * k * out_dim * 4
    eps_resident = eps_slab_bytes <= (8 << 20)
    resident_bytes = 3 * k * out_dim * 4 + (eps_slab_bytes if eps_resident
                                            else 2 * k * out_dim * 4)
    if tile_n is None:
        tile_n = _choose_tile_n(n_total, k, out_dim, resident_bytes,
                                in_itemsize, out_itemsize,
                                tile_budget_bytes=int(0.6 * vmem_limit))

    # Pad rows to a multiple of the tile (zero rows sliced off afterwards -> exact).
    n_pad = (-n_total) % tile_n
    if n_pad:
        pad_width = ((0, n_pad), (0, 0)) if shared else ((0, 0), (0, n_pad), (0, 0))
        phi_flat = jnp.pad(phi_flat, pad_width)
    n_padded = n_total + n_pad
    n_tiles = n_padded // tile_n

    # Row-tile OUTER, mc INNER: shared-phi block index depends only on j -> phi stays
    # VMEM-resident across the inner mc sweep (streamed from HBM once, not mc times).
    grid = (n_tiles, mc)

    if shared:
        phi_spec = pl.BlockSpec((tile_n, k), lambda j, i: (j, 0))
    else:
        phi_spec = pl.BlockSpec((None, tile_n, k), lambda j, i: (i, j, 0))

    if eps_resident:
        eps_spec = pl.BlockSpec((mc, k, out_dim), lambda j, i: (0, 0, 0))
    else:
        eps_spec = pl.BlockSpec((None, k, out_dim), lambda j, i: (i, 0, 0))

    in_specs = [
        phi_spec,
        pl.BlockSpec((k, out_dim), lambda j, i: (0, 0)),              # w_mu    (resident)
        pl.BlockSpec((k, out_dim), lambda j, i: (0, 0)),              # w_sigma (resident)
        eps_spec,                                                     # w_eps
    ]
    out_spec = pl.BlockSpec((None, tile_n, out_dim), lambda j, i: (i, j, 0))

    flops = 2 * mc * n_total * k * out_dim
    phi_bytes = (1 if shared else mc) * n_padded * k * in_itemsize
    bytes_accessed = (phi_bytes
                      + (mc + 2) * k * out_dim * 4
                      + mc * n_padded * out_dim * out_itemsize)
    cost = pl.CostEstimate(flops=int(flops), transcendentals=0,
                           bytes_accessed=int(bytes_accessed))

    kernel = functools.partial(_rff_linear_kernel, compute_dtype=compute_dtype,
                               eps_resident=eps_resident)
    out = pl.pallas_call(
        kernel,
        out_shape=jax.ShapeDtypeStruct((mc, n_padded, out_dim), out_dtype),
        grid_spec=pltpu.PrefetchScalarGridSpec(
            num_scalar_prefetch=0,
            grid=grid,
            in_specs=in_specs,
            out_specs=out_spec,
        ),
        compiler_params=pltpu.CompilerParams(
            dimension_semantics=("parallel", "parallel"),   # no cross-step state
            vmem_limit_bytes=vmem_limit,
        ),
        cost_estimate=cost,
        interpret=interpret,
    )(phi_flat, w_mu_f, w_sigma, w_eps_f)

    out = out[:, :n_total, :]
    return out.reshape(mc, b_dim, n_total // b_dim, out_dim)


# --------------------------------------------------------------------------------------
# Pure-JAX reference (direct transcription of RFFLinearLayer.forward).
# --------------------------------------------------------------------------------------
def rff_linear_reference(phi, w_mu, w_logsigma, w_eps):
    w_var = jnp.exp(w_logsigma * 0.5)
    w_q = w_mu + w_var * w_eps                 # (mc, K, out_dim)
    w_q = w_q[:, None]                         # unsqueeze(dim=1)
    return jnp.matmul(phi, w_q, precision=jax.lax.Precision.HIGHEST)


if __name__ == "__main__":
    key = jax.random.PRNGKey(0)
    mc, N, n_rf, out_dim = 4, 256, 64, 128     # kernel='rbf' -> feature dim K = 2 * n_rf = 128
    K = 2 * n_rf

    k_eps, k_phi4, k_phi2 = jax.random.split(key, 3)

    # Parameters mirroring RFFLinearLayer.__init__ (kernel='rbf', N_RF=n_rf, out_dim).
    w_mu = jnp.zeros((K, out_dim), jnp.float32)            # torch.zeros
    w_logsigma = jnp.ones((K, out_dim), jnp.float32)       # torch.ones
    w_eps = jax.random.normal(k_eps, (mc, K, out_dim), dtype=jnp.float32)
    # TODO(synk): w_mu_prior / w_logsigma_prior are unused in forward (prior/KL bookkeeping
    # stays host-side, no kernel equivalent needed).

    # phi as produced by the preceding RFF feature layer: (mc, 1, N, K); also test 2-D phi.
    phi4 = jax.random.normal(k_phi4, (mc, 1, N, K), dtype=jnp.float32)
    phi2 = jax.random.normal(k_phi2, (N, K), dtype=jnp.float32)

    for phi in (phi4, phi2):
        out = jax.block_until_ready(rff_linear_forward(phi, w_mu, w_logsigma, w_eps))
        ref = rff_linear_reference(phi, w_mu, w_logsigma, w_eps)
        assert out.shape == ref.shape, (out.shape, ref.shape)
        max_err = float(jnp.max(jnp.abs(out - ref)))
        assert jnp.allclose(out, ref, rtol=1e-4, atol=1e-3), ("f32 path", max_err)

    # bf16 MXU operands (2x MXU throughput), f32 accumulation.
    out_bf = jax.block_until_ready(
        rff_linear_forward(phi4, w_mu, w_logsigma, w_eps, compute_dtype=jnp.bfloat16))
    ref4 = rff_linear_reference(phi4, w_mu, w_logsigma, w_eps)
    max_err_bf = float(jnp.max(jnp.abs(out_bf - ref4)))
    assert jnp.allclose(out_bf, ref4, rtol=5e-2, atol=5e-1), ("bf16 path", max_err_bf)

    print("KERNEL_OK")
</pallas_src>

<mosaic_0001>
module attributes {stable_mosaic.version = 11 : i64} {
  func.func @_rff_linear_kernel(%arg0: i32, %arg1: i32, %arg2: memref<1x256x128xf32, #tpu.memory_space<vmem>>, %arg3: memref<128x128xf32, #tpu.memory_space<vmem>>, %arg4: memref<128x128xf32, #tpu.memory_space<vmem>>, %arg5: memref<4x128x128xf32, #tpu.memory_space<vmem>>, %arg6: memref<1x256x128xf32, #tpu.memory_space<vmem>>) attributes {dimension_semantics = [#tpu.dimension_semantics<parallel>, #tpu.dimension_semantics<parallel>], iteration_bounds = array<i64: 1, 4>, scalar_prefetch = 0 : i64, scratch_operands = 0 : i64, tpu.core_type = #tpu.core_type<tc>, window_params = [{transform_indices = @transform_0, window_bounds = array<i64: 1, 256, 128>}, {pipeline_mode = #tpu.pipeline_mode<synchronous>, transform_indices = @transform_1, window_bounds = array<i64: 128, 128>}, {pipeline_mode = #tpu.pipeline_mode<synchronous>, transform_indices = @transform_2, window_bounds = array<i64: 128, 128>}, {pipeline_mode = #tpu.pipeline_mode<synchronous>, transform_indices = @transform_3, window_bounds = array<i64: 4, 128, 128>}, {transform_indices = @transform_4, window_bounds = array<i64: 1, 256, 128>}]} {
    %0 = arith.index_cast %arg1 : i32 to index
    %c0 = arith.constant 0 : index
    %c0_0 = arith.constant 0 : index
    %1 = vector.load %arg5[%0, %c0, %c0_0] : memref<4x128x128xf32, #tpu.memory_space<vmem>>, vector<1x128x128xf32>
    %2 = vector.shape_cast %1 : vector<1x128x128xf32> to vector<128x128xf32>
    %c0_1 = arith.constant 0 : index
    %c0_2 = arith.constant 0 : index
    %3 = vector.load %arg3[%c0_1, %c0_2] : memref<128x128xf32, #tpu.memory_space<vmem>>, vector<128x128xf32>
    %c0_3 = arith.constant 0 : index
    %c0_4 = arith.constant 0 : index
    %4 = vector.load %arg4[%c0_3, %c0_4] : memref<128x128xf32, #tpu.memory_space<vmem>>, vector<128x128xf32>
    %5 = arith.mulf %4, %2 : vector<128x128xf32>
    %6 = arith.addf %3, %5 : vector<128x128xf32>
    %c0_5 = arith.constant 0 : index
    %c0_6 = arith.constant 0 : index
    %c0_7 = arith.constant 0 : index
    %7 = vector.load %arg2[%c0_5, %c0_6, %c0_7] : memref<1x256x128xf32, #tpu.memory_space<vmem>>, vector<1x256x128xf32>
    %8 = vector.shape_cast %7 : vector<1x256x128xf32> to vector<256x128xf32>
    %cst = arith.constant dense<0.000000e+00> : vector<256x128xf32>
    %9 = tpu.matmul %8, %6, %cst {dimension_numbers = #tpu.dot_dimension_numbers<[1], [0], [0], [1], [0, 0, 1, 1], [], []>} : vector<256x128xf32>, vector<128x128xf32>, vector<256x128xf32> -> vector<256x128xf32>
    %c0_8 = arith.constant 0 : index
    %c0_9 = arith.constant 0 : index
    %c0_10 = arith.constant 0 : index
    %10 = vector.load %arg6[%c0_8, %c0_9, %c0_10] : memref<1x256x128xf32, #tpu.memory_space<vmem>>, vector<1x256x128xf32>
    %11 = vector.shape_cast %10 : vector<1x256x128xf32> to vector<256x128xf32>
    %12 = vector.shape_cast %9 : vector<256x128xf32> to vector<1x256x128xf32>
    tpu.vector_store %arg6[%c0_8, %c0_9, %c0_10], %12 {strides = array<i32>} : memref<1x256x128xf32, #tpu.memory_space<vmem>>, vector<1x256x128xf32>,
    return
  }
  func.func @transform_0(%arg0: i32, %arg1: i32) -> (i32, i32, i32) {
    %c0_i32 = arith.constant 0 : i32
    %c0_i32_0 = arith.constant 0 : i32
    return %arg1, %arg0, %c0_i32 : i32, i32, i32
  }
  func.func @transform_1(%arg0: i32, %arg1: i32) -> (i32, i32) {
    %c0_i32 = arith.constant 0 : i32
    %c0_i32_0 = arith.constant 0 : i32
    %c0_i32_1 = arith.constant 0 : i32
    return %c0_i32, %c0_i32_0 : i32, i32
  }
  func.func @transform_2(%arg0: i32, %arg1: i32) -> (i32, i32) {
    %c0_i32 = arith.constant 0 : i32
    %c0_i32_0 = arith.constant 0 : i32
    %c0_i32_1 = arith.constant 0 : i32
    return %c0_i32, %c0_i32_0 : i32, i32
  }
  func.func @transform_3(%arg0: i32, %arg1: i32) -> (i32, i32, i32) {
    %c0_i32 = arith.constant 0 : i32
    %c0_i32_0 = arith.constant 0 : i32
    %c0_i32_1 = arith.constant 0 : i32
    %c0_i32_2 = arith.constant 0 : i32
    return %c0_i32, %c0_i32_0, %c0_i32_1 : i32, i32, i32
  }
  func.func @transform_4(%arg0: i32, %arg1: i32) -> (i32, i32, i32) {
    %c0_i32 = arith.constant 0 : i32
    %c0_i32_0 = arith.constant 0 : i32
    return %arg1, %arg0, %c0_i32 : i32, i32, i32
  }
}

</mosaic_0001>

<bundles_post_ra>
// kernel: tpu_custom_call.1
= control target key start
LH: loop header
LB: loop body
LE: loop exit
PB: predicated region body
PF: predicated region fallthrough
CT: control target
= control target key end

     0   :  { %9 = vsyncpa [#allocation3], 0  ;;  %s1598_s0 = inlined_call_operand.hbm [shape: f32[4,256,128], index: 0, kind: input, shape index: {}]   ;;  %s1599_s1 = inlined_call_operand.hbm [shape: f32[128,128], index: 1, kind: input, shape index: {}]   ;;  %s1600_s2 = inlined_call_operand.hbm [shape: f32[128,128], index: 2, kind: input, shape index: {}]   ;;  %s1601_s3 = inlined_call_operand.hbm [shape: f32[4,128,128], index: 3, kind: input, shape index: {}]   ;;  %s1602_s4 = inlined_call_operand.hbm [shape: f32[4,256,128], index: 4, kind: output, shape index: {}]  }
   0x1   :  { %11 = vsyncpa [#allocation3 + $0x1], 0 }
   0x2   :  { %12 = vsyncpa [#allocation6], 0 }
   0x3   :  { %13 = vsyncpa [#allocation9], 0 }
   0x4   :  { %14 = vsyncpa [#allocation4], 0 }
   0x5   :  { %16 = vsyncpa [#allocation4 + $0x1], 0  ;;  %s1296_s15 = smov 0   ;;  %s1298_s16 = smov 0  }
   0x6   :  { %s1300_s17 = smov 0   ;;  %s1302_s18 = smov 0  }
   0x7   :  { %s1304_s19 = smov 0   ;;  %s1306_s20 = smov 0  }
   0x8 LB: > { %s785_s21 = sadd.s32 4294967295, %s1260_s20   ;;  %s786_s22 = sadd.s32 4294967294, %s1260_s20   ;;  %s1260_s20 = sphi %s1306_s20, %s22_s20   ;;  %s1256_s19 = sphi %s1304_s19, %s1622_s19   ;;  %s1252_s18 = sphi %s1302_s18, %s1621_s18   ;;  %s1248_s17 = sphi %s1300_s17, %s1620_s17   ;;  %s1244_s16 = sphi %s1298_s16, %s1619_s16   ;;  %s1240_s15 = sphi %s1296_s15, %s1618_s15  }
   0x9   : > { %p56_p0 = scmp.ne.s32.totalorder %s1244_s16, %s1240_s15  ;;  %p1330_p1 = scmp.eq.s32.totalorder %s785_s21, 0 }
   0xa   : > { %p1334_p2 = scmp.eq.s32.totalorder %s785_s21, 3  ;;  %p151_p3 = scmp.eq.s32.totalorder %s786_s22, 3 }
   0xb   : > { %p1340_p4 = por %p1330_p1, %p56_p0  ;;  %p787_p5 = scmp.ge.s32.totalorder %s1260_s20, 1 }
   0xc   : > { %p1345_p6 = por %p151_p3, %p56_p0  ;;  %p158_p7 = scmp.lt.s32.totalorder %s1260_s20, 5 }
   0xd   : > { %s1262_s28 = smov [#allocation5]   ;;  %s1263_s5 = smov [#allocation7]  }
   0xe   : > { %s1609_s26 = scalar_select %p1345_p6, 1, 0 }
   0xf   : > { %p1350_p8 = pnand %p787_p5, %p158_p7  ;;  %s170_s29 = sshll.u32 %s1262_s28, 4  ;;  %s171_s29 = int_to_ptr.vmem [resolvable:$true] %s170_s29 }
  0x10   : > { %s183_s6 = sshll.u32 %s1263_s5, 4  ;;  %s1264_s7 = smov [#allocation8]   ;;  %s184_s6 = int_to_ptr.vmem [resolvable:$true] %s183_s6 }
  0x11   : > { %p985_p9 = pneg %p1350_p8  ;;  %s196_s8 = sshll.u32 %s1264_s7, 4  ;;  %s197_s8 = int_to_ptr.vmem [resolvable:$true] %s196_s8 }
  0x12   : > { %s1077_s9 = scalar_lea.vmem %s171_s29, 2048  ;;  %p1085_p3 = scmp.lt.s32.totalorder %s171_s29, %s171_s29 }
  0x13   : > { %p1358_p10 = pnand %p985_p9, %p1330_p1  ;;  %p1078_p12 = scmp.ne.s32.totalorder %s171_s29, %s1077_s9 }
  0x14   : > { %p1086_p5 = scmp.lt.s32.totalorder %s1077_s9, %s1077_s9 }
  0x15   : > { %p1068_p11 = pneg %p1358_p10 }
  0x16   : > { %p1087_p7 = por %p1086_p5, %p1085_p3 }
  0x17   : > { %p1080_p13 = pnand %p1078_p12, %p1068_p11 }
  0x19   : > { %p1081_p0 = pneg %p1080_p13 }
  0x1b   : > { %p1088_p9 = pnand %p1087_p7, %p1081_p0 }
  0x1d   : > { %1091 = shalt.err (!%p1088_p9)
}
  0x1e   : > { %s1603_s10 = smov 128   ;;  %s1604_s11 = smov 8  }
  0x1f   : > { %988 = dma.hbm_to_vmem [thread:$0]  (!%p1358_p10), %s1599_s1, 2048, %s171_s29, [#allocation6], %s1603_s10, %s1603_s10, %s1604_s11  }
  0x20   : > { %s1103_s14 = scalar_lea.vmem %s184_s6, 2048  ;;  %p1111_p0 = scmp.lt.s32.totalorder %s184_s6, %s184_s6 }
  0x21   : > { %p1104_p12 = scmp.ne.s32.totalorder %s184_s6, %s1103_s14  ;;  %p1112_p5 = scmp.lt.s32.totalorder %s1103_s14, %s1103_s14 }
  0x23   : > { %p1106_p13 = pnand %p1104_p12, %p1068_p11  ;;  %p1113_p7 = por %p1112_p5, %p1111_p0 }
  0x25   : > { %p1107_p3 = pneg %p1106_p13 }
  0x27   : > { %p1114_p9 = pnand %p1113_p7, %p1107_p3 }
  0x29   : > { %1117 = shalt.err (!%p1114_p9)
}
  0x2a   : > { %991 = dma.hbm_to_vmem [thread:$0]  (!%p1358_p10), %s1600_s2, 2048, %s184_s6, [#allocation6], %s1603_s10, %s1603_s10, %s1604_s11  }
  0x2b   : > { %s1129_s28 = scalar_lea.vmem %s197_s8, 8192  ;;  %p1137_p0 = scmp.lt.s32.totalorder %s197_s8, %s197_s8 }
  0x2c   : > { %p1130_p6 = scmp.ne.s32.totalorder %s197_s8, %s1129_s28  ;;  %p1138_p3 = scmp.lt.s32.totalorder %s1129_s28, %s1129_s28 }
  0x2e   : > { %p1132_p12 = pnand %p1130_p6, %p1068_p11  ;;  %p1139_p5 = por %p1138_p3, %p1137_p0 }
  0x30   : > { %p1133_p13 = pneg %p1132_p12 }
  0x32   : > { %p1140_p7 = pnand %p1139_p5, %p1133_p13 }
  0x34   : > { %1143 = shalt.err (!%p1140_p7)
}
  0x35   : > { %994 = dma.hbm_to_vmem [thread:$0]  (!%p1358_p10), %s1601_s3, 8192, %s197_s8, [#allocation9], %s1603_s10, %s1603_s10, %s1604_s11  }
  0x36   : > { %s43_s6 = sadd.s32 1, %s1248_s17  ;;  %s31_s30 = sadd.s32 1, %s1256_s19 }
  0x37   : > { %p50_p6 = scmp.ne.s32.totalorder %s1248_s17, %s1244_s16  ;;  %p32_p11 = scmp.ge.s32.totalorder %s31_s30, 4 }
  0x38   : > { %p51_p9 = scmp.eq.s32.totalorder %s1260_s20, 0  ;;  %p1006_p13 = scmp.lt.s32.totalorder %s1260_s20, 4 }
  0x39   : > { %p1404_p12 = por %p1334_p2, %p50_p6  ;;  %s1624_s30 = smov (%p32_p11, %s31_s30), 0 }
  0x3a   : > { %p52_p0 = por %p51_p9, %p50_p6  ;;  %s210_s9 = sand.u32 1, %s1248_s17  }
  0x3b   : > { %s1612_s7 = scalar_select %p1404_p12, 1, 0 }
  0x3c   : > { %s38_s12 = ssub.s32 %s1256_s19, %s1624_s30  ;;  %s792_s8 = sshll.u32 %s210_s9, 8 }
  0x3d   : > { %p41_p3 = scmp.eq.s32.totalorder %s38_s12, 0  ;;  %s807_s13 = sshll.u32 %s1256_s19, 12 }
  0x3e   : > { %s222_s24 = scalar_lea.hbm %s1598_s0, %s807_s13  ;;  %s214_s28 = scalar_lea.vmem [#allocation2], %s792_s8 }
  0x3f   : > { %s1416_s14 = scalar_select %p41_p3, %s1248_s17, %s43_s6  }
  0x40   : > { %s223_s29 = sshll.u32 %s214_s28, 4  ;;  %p1423_p2 = pnand %p1006_p13, %p52_p0  ;;  %s224_s29 = int_to_ptr.vmem [resolvable:$true] %s223_s29 }
  0x41   : > { %s211_s10 = scalar_lea.sflag [#allocation3], %s210_s9  ;;  %s1157_s12 = scalar_lea.vmem %s224_s29, 4096 }
  0x42   : > { %p1146_p10 = pneg %p1423_p2  ;;  %p1158_p5 = scmp.ne.s32.totalorder %s224_s29, %s1157_s12 }
  0x43   : > { %s1267_s6 = smov [#allocation2]  }
  0x44   : > { %p1160_p7 = pnand %p1158_p5, %p1146_p10  ;;  %s1162_s11 = sshll.u32 %s1267_s6, 4  ;;  %s1163_s11 = int_to_ptr.vmem [resolvable:$false] %s1162_s11 }
  0x45   : > { %s1164_s13 = scalar_lea.vmem %s1163_s11, 8192  ;;  %p1165_p11 = scmp.lt.s32.totalorder %s224_s29, %s1163_s11 }
  0x46   : > { %p1161_p6 = pneg %p1160_p7  ;;  %p1166_p9 = scmp.lt.s32.totalorder %s1164_s13, %s1157_s12 }
  0x48   : > { %p1167_p3 = por %p1166_p9, %p1165_p11 }
  0x4a   : > { %p1168_p12 = pnand %p1167_p3, %p1161_p6 }
  0x4c   : > { %1171 = shalt.err (!%p1168_p12)
}
  0x4d   : > { %s1614_s8 = smov 8   ;;  %s1615_s21 = smov 128  }
  0x4e   : > { %998 = dma.hbm_to_vmem [thread:$0]  (!%p1423_p2), %s222_s24, 4096, %s224_s29, %s211_s10, %s1615_s21, %s1615_s21, %s1614_s8  }
  0x4f   : > { %235 = sbr.rel (%p1350_p8) target bundleno = 366 (0x16e), region = 36  ;;  %s1437_s9 = sand.u32 (!%p1350_p8), 1, %s1244_s16  }
  0x50   : > { %s796_s11 = sshll.u32 (!%p1350_p8), %s1437_s9, 8  ;;  %s238_s22 = scalar_lea.sflag (!%p1350_p8), [#allocation3], %s1437_s9 }
  0x51   : > { %s1443_s28 = scalar_lea.vmem (!%p1350_p8), [#allocation2], %s796_s11 }
  0x54   : > { %1223 = dma.done.wait (%p1340_p4), %s238_s22, 4096  }
  0x55   : > { %1225 = vsyncadd (%p1340_p4), %s238_s22, 4294963200 }
  0x56   : > { %1227 = dma.done.wait (%p1330_p1), [#allocation6], 4096  }
  0x57   : > { %1229 = vsyncadd (%p1330_p1), [#allocation6], 4294963200 }
  0x58   : > { %1231 = dma.done.wait (%p1330_p1), [#allocation9], 8192  }
  0x59   : > { %1233 = vsyncadd (%p1330_p1), [#allocation9], 4294959104  ;;  %s801_s27 = sshll.u32 %s1252_s18, 7  ;;  %v313_v1 = vld [vmem:[#allocation5 + $0x78] sm:$0xff]  ;;  %v312_v5 = vld [vmem:[#allocation5 + $0x70] sm:$0xff]  ;;  %s1510_s23 = scalar_lea.vmem [#allocation10], %s796_s11 }
  0x5a   : > { %s1458_s10 = scalar_lea.vmem [#allocation8], %s801_s27  ;;  %v329_v2 = vld [vmem:[#allocation7 + $0x78] sm:$0xff]  ;;  %v328_v6 = vld [vmem:[#allocation7 + $0x70] sm:$0xff]  ;;  %v311_v9 = vld [vmem:[#allocation5 + $0x68] sm:$0xff]  ;;  %s808_s25 = sshll.u32 %s1252_s18, 12 }
  0x5b   : > { %v297_v0 = vld [vmem:[%s1458_s10 + $0x78] sm:$0xff]  ;;  %v296_v4 = vld [vmem:[%s1458_s10 + $0x70] sm:$0xff]  ;;  %v295_v8 = vld [vmem:[%s1458_s10 + $0x68] sm:$0xff]  ;;  %s667_s24 = sshll.u32 %s1510_s23, 4  ;;  %s1545_s12 = scalar_lea.hbm %s1602_s4, %s808_s25  ;;  %s1547_s24 = int_to_ptr.vmem [resolvable:$true] %s667_s24 }
  0x5c   : > { %v345_v3 = vmul.f32 %v329_v2, %v297_v0  ;;  %v344_v7 = vmul.f32 %v328_v6, %v296_v4  ;;  %v327_v10 = vld [vmem:[#allocation7 + $0x68] sm:$0xff]  ;;  %v294_v13 = vld [vmem:[%s1458_s10 + $0x60] sm:$0xff]  ;;  %v293_v18 = vld [vmem:[%s1458_s10 + $0x58] sm:$0xff]  ;;  %s652_s18 = scalar_lea.sflag [#allocation4], %s1437_s9  ;;  %s1172_s6 = scalar_lea.vmem %s1547_s24, 4096 }
  0x5d   : > { %v343_v12 = vmul.f32 %v327_v10, %v295_v8  ;;  %v326_v14 = vld [vmem:[#allocation7 + $0x60] sm:$0xff]  ;;  %v325_v19 = vld [vmem:[#allocation7 + $0x58] sm:$0xff]  ;;  %v292_v22 = vld [vmem:[%s1458_s10 + $0x50] sm:$0xff]  ;;  %p1173_p1 = scmp.ne.s32.totalorder %s1547_s24, %s1172_s6  ;;  %p1616_p4 = scmp.ne.s32.totalorder %s1612_s7, 0 }
  0x5e   : > { %v361_v11 = vadd.f32 %v345_v3, %v313_v1  ;;  %v360_v15 = vadd.f32 %v344_v7, %v312_v5  ;;  %v310_v16 = vld [vmem:[#allocation5 + $0x60] sm:$0xff]  ;;  %v342_v17 = vmul.f32 %v326_v14, %v294_v13  ;;  %v341_v21 = vmul.f32 %v325_v19, %v293_v18  ;;  %v324_v23 = vld [vmem:[#allocation7 + $0x50] sm:$0xff]  ;;  %v309_v24 = vld [vmem:[#allocation5 + $0x58] sm:$0xff]  ;;  %s1268_s13 = smov [#allocation10]  }
  0x5f   : > { %v359_v20 = vadd.f32 %v343_v12, %v311_v9  ;;  %v291_v25 = vld [vmem:[%s1458_s10 + $0x48] sm:$0xff]  ;;  %v340_v28 = vmul.f32 %v324_v23, %v292_v22  ;;  %v308_v29 = vld [vmem:[#allocation5 + $0x50] sm:$0xff]  ;;  %v290_v30 = vld [vmem:[%s1458_s10 + $0x40] sm:$0xff]  ;;  %p1174_p8 = pnand %p1173_p1, %p1616_p4  ;;  %s1176_s8 = sshll.u32 %s1268_s13, 4  ;;  %s1177_s8 = int_to_ptr.vmem [resolvable:$false] %s1176_s8 }
  0x60   : > { %857 = vmatprep.subr.mxu0 %v361_v11  ;;  %937 = vmatprep.subr.mxu1 %v361_v11  ;;  %v323_v26 = vld [vmem:[#allocation7 + $0x48] sm:$0xff]  ;;  %v358_v27 = vadd.f32 %v342_v17, %v310_v16  ;;  %v322_v31 = vld [vmem:[#allocation7 + $0x40] sm:$0xff]  ;;  %v357_v32 = vadd.f32 %v341_v21, %v309_v24  ;;  %v289_v35 = vld [vmem:[%s1458_s10 + $0x38] sm:$0xff]  ;;  %s1178_s21 = scalar_lea.vmem %s1177_s8, 8192  ;;  %p1179_p13 = scmp.lt.s32.totalorder %s1547_s24, %s1177_s8 }
  0x61   : > { %858 = vmatpush3.msra.mxu0 %v361_v11  ;;  %953 = vmatpush3.msra.mxu1 %v361_v11  ;;  %v339_v33 = vmul.f32 %v323_v26, %v291_v25  ;;  %v307_v34 = vld [vmem:[#allocation5 + $0x48] sm:$0xff]  ;;  %v321_v36 = vld [vmem:[#allocation7 + $0x38] sm:$0xff]  ;;  %v356_v37 = vadd.f32 %v340_v28, %v308_v29  ;;  %v338_v38 = vmul.f32 %v322_v31, %v290_v30  ;;  %v306_v39 = vld [vmem:[#allocation5 + $0x40] sm:$0xff]  ;;  %p1175_p12 = pneg %p1174_p8  ;;  %p1180_p0 = scmp.lt.s32.totalorder %s1178_s21, %s1172_s6 }
  0x62   : > { %859 = vmatprep.subr.mxu0 %v360_v15  ;;  %938 = vmatprep.subr.mxu1 %v360_v15  ;;  %v288_v40 = vld [vmem:[%s1458_s10 + $0x30] sm:$0xff]  ;;  %v337_v43 = vmul.f32 %v321_v36, %v289_v35  ;;  %v305_v44 = vld [vmem:[#allocation5 + $0x38] sm:$0xff]  ;;  %v287_v45 = vld [vmem:[%s1458_s10 + $0x28] sm:$0xff] }
  0x63   : > { %860 = vmatpush3.msra.mxu0 %v360_v15  ;;  %954 = vmatpush3.msra.mxu1 %v360_v15  ;;  %v320_v41 = vld [vmem:[#allocation7 + $0x30] sm:$0xff]  ;;  %v355_v42 = vadd.f32 %v339_v33, %v307_v34  ;;  %v319_v46 = vld [vmem:[#allocation7 + $0x28] sm:$0xff]  ;;  %v354_v47 = vadd.f32 %v338_v38, %v306_v39  ;;  %v286_v50 = vld [vmem:[%s1458_s10 + $0x20] sm:$0xff]  ;;  %p1181_p2 = por %p1180_p0, %p1179_p13 }
  0x64   : > { %861 = vmatprep.subr.mxu0 %v359_v20  ;;  %939 = vmatprep.subr.mxu1 %v359_v20  ;;  %v336_v48 = vmul.f32 %v320_v41, %v288_v40  ;;  %v304_v49 = vld [vmem:[#allocation5 + $0x30] sm:$0xff]  ;;  %v318_v51 = vld [vmem:[#allocation7 + $0x20] sm:$0xff]  ;;  %v353_v52 = vadd.f32 %v337_v43, %v305_v44  ;;  %v335_v53 = vmul.f32 %v319_v46, %v287_v45  ;;  %v303_v54 = vld [vmem:[#allocation5 + $0x28] sm:$0xff] }
  0x65   : > { %862 = vmatpush3.msra.mxu0 %v359_v20  ;;  %955 = vmatpush3.msra.mxu1 %v359_v20  ;;  %v285_v55 = vld [vmem:[%s1458_s10 + $0x18] sm:$0xff]  ;;  %v334_v58 = vmul.f32 %v318_v51, %v286_v50  ;;  %v302_v59 = vld [vmem:[#allocation5 + $0x20] sm:$0xff]  ;;  %v284_v60 = vld [vmem:[%s1458_s10 + $0x10] sm:$0xff]  ;;  %p1182_p10 = pnand %p1181_p2, %p1175_p12 }
  0x66   : > { %863 = vmatprep.subr.mxu0 %v358_v27  ;;  %940 = vmatprep.subr.mxu1 %v358_v27  ;;  %v317_v56 = vld [vmem:[#allocation7 + $0x18] sm:$0xff]  ;;  %v352_v57 = vadd.f32 %v336_v48, %v304_v49  ;;  %v316_v61 = vld [vmem:[#allocation7 + $0x10] sm:$0xff]  ;;  %v351_v62 = vadd.f32 %v335_v53, %v303_v54  ;;  %v283_v1 = vld [vmem:[%s1458_s10 + $0x8] sm:$0xff] }
  0x67   : > { %864 = vmatpush3.msra.mxu0 %v358_v27  ;;  %956 = vmatpush3.msra.mxu1 %v358_v27  ;;  %v333_v63 = vmul.f32 %v317_v56, %v285_v55  ;;  %v301_v0 = vld [vmem:[#allocation5 + $0x18] sm:$0xff]  ;;  %v315_v2 = vld [vmem:[#allocation7 + $0x8] sm:$0xff]  ;;  %v350_v3 = vadd.f32 %v334_v58, %v302_v59  ;;  %v332_v4 = vmul.f32 %v316_v61, %v284_v60  ;;  %v300_v5 = vld [vmem:[#allocation5 + $0x10] sm:$0xff] }
  0x68   : > { %865 = vmatprep.subr.mxu0 %v357_v32  ;;  %941 = vmatprep.subr.mxu1 %v357_v32  ;;  %v282_v6 = vld [vmem:[%s1458_s10] sm:$0xff]  ;;  %v331_v9 = vmul.f32 %v315_v2, %v283_v1  ;;  %v299_v10 = vld [vmem:[#allocation5 + $0x8] sm:$0xff]  ;;  %v364_v20 = vld [vmem:[%s1443_s28 + $0x10] sm:$0xff] }
  0x69   : > { %866 = vmatpush3.msra.mxu0 %v357_v32  ;;  %957 = vmatpush3.msra.mxu1 %v357_v32  ;;  %v314_v7 = vld [vmem:[#allocation7] sm:$0xff]  ;;  %v349_v8 = vadd.f32 %v333_v63, %v301_v0  ;;  %v348_v11 = vadd.f32 %v332_v4, %v300_v5  ;;  %v363_v18 = vld [vmem:[%s1443_s28 + $0x8] sm:$0xff]  ;;  %v380_v21 = vld [vmem:[%s1443_s28 + $0x90] sm:$0xff] }
  0x6a   : > { %867 = vmatprep.subr.mxu0 %v356_v37  ;;  %942 = vmatprep.subr.mxu1 %v356_v37  ;;  %v330_v12 = vmul.f32 %v314_v7, %v282_v6  ;;  %v298_v13 = vld [vmem:[#allocation5] sm:$0xff]  ;;  %v347_v14 = vadd.f32 %v331_v9, %v299_v10  ;;  %v379_v19 = vld [vmem:[%s1443_s28 + $0x88] sm:$0xff]  ;;  %v365_v22 = vld [vmem:[%s1443_s28 + $0x18] sm:$0xff] }
  0x6b   : > { %868 = vmatpush3.msra.mxu0 %v356_v37  ;;  %958 = vmatpush3.msra.mxu1 %v356_v37  ;;  %v362_v16 = vld [vmem:[%s1443_s28] sm:$0xff]  ;;  %v381_v23 = vld [vmem:[%s1443_s28 + $0x98] sm:$0xff]  ;;  %v367_v26 = vld [vmem:[%s1443_s28 + $0x28] sm:$0xff] }
  0x6c   : > { %869 = vmatprep.subr.mxu0 %v355_v42  ;;  %943 = vmatprep.subr.mxu1 %v355_v42  ;;  %v346_v15 = vadd.f32 %v330_v12, %v298_v13  ;;  %v378_v17 = vld [vmem:[%s1443_s28 + $0x80] sm:$0xff]  ;;  %v383_v27 = vld [vmem:[%s1443_s28 + $0xa8] sm:$0xff]  ;;  %v368_v28 = vld [vmem:[%s1443_s28 + $0x30] sm:$0xff] }
  0x6d   : > { %870 = vmatpush3.msra.mxu0 %v355_v42  ;;  %959 = vmatpush3.msra.mxu1 %v355_v42  ;;  %v366_v24 = vld [vmem:[%s1443_s28 + $0x20] sm:$0xff]  ;;  %v384_v29 = vld [vmem:[%s1443_s28 + $0xb0] sm:$0xff]  ;;  %v369_v30 = vld [vmem:[%s1443_s28 + $0x38] sm:$0xff] }
  0x6e   : > { %871 = vmatprep.subr.mxu0 %v354_v47  ;;  %944 = vmatprep.subr.mxu1 %v354_v47  ;;  %v382_v25 = vld [vmem:[%s1443_s28 + $0xa0] sm:$0xff]  ;;  %v385_v31 = vld [vmem:[%s1443_s28 + $0xb8] sm:$0xff]  ;;  %v371_v34 = vld [vmem:[%s1443_s28 + $0x48] sm:$0xff] }
  0x6f   : > { %872 = vmatpush3.msra.mxu0 %v354_v47  ;;  %960 = vmatpush3.msra.mxu1 %v354_v47  ;;  %v370_v32 = vld [vmem:[%s1443_s28 + $0x40] sm:$0xff]  ;;  %v387_v35 = vld [vmem:[%s1443_s28 + $0xc8] sm:$0xff]  ;;  %v372_v36 = vld [vmem:[%s1443_s28 + $0x50] sm:$0xff] }
  0x70   : > { %873 = vmatprep.subr.mxu0 %v353_v52  ;;  %945 = vmatprep.subr.mxu1 %v353_v52  ;;  %v386_v33 = vld [vmem:[%s1443_s28 + $0xc0] sm:$0xff]  ;;  %v388_v37 = vld [vmem:[%s1443_s28 + $0xd0] sm:$0xff]  ;;  %v373_v38 = vld [vmem:[%s1443_s28 + $0x58] sm:$0xff] }
  0x71   : > { %874 = vmatpush3.msra.mxu0 %v353_v52  ;;  %961 = vmatpush3.msra.mxu1 %v353_v52  ;;  %v389_v39 = vld [vmem:[%s1443_s28 + $0xd8] sm:$0xff]  ;;  %v374_v40 = vld [vmem:[%s1443_s28 + $0x60] sm:$0xff]  ;;  %v375_v42 = vld [vmem:[%s1443_s28 + $0x68] sm:$0xff] }
  0x72   : > { %875 = vmatprep.subr.mxu0 %v352_v57  ;;  %946 = vmatprep.subr.mxu1 %v352_v57  ;;  %v390_v41 = vld [vmem:[%s1443_s28 + $0xe0] sm:$0xff]  ;;  %v391_v43 = vld [vmem:[%s1443_s28 + $0xe8] sm:$0xff]  ;;  %v376_v44 = vld [vmem:[%s1443_s28 + $0x70] sm:$0xff] }
  0x73   : > { %876 = vmatpush3.msra.mxu0 %v352_v57  ;;  %962 = vmatpush3.msra.mxu1 %v352_v57  ;;  %v392_v45 = vld [vmem:[%s1443_s28 + $0xf0] sm:$0xff]  ;;  %v377_v46 = vld [vmem:[%s1443_s28 + $0x78] sm:$0xff] }
  0x74   : > { %877 = vmatprep.subr.mxu0 %v351_v62  ;;  %947 = vmatprep.subr.mxu1 %v351_v62  ;;  %v393_v47 = vld [vmem:[%s1443_s28 + $0xf8] sm:$0xff] }
  0x75   : > { %878 = vmatpush3.msra.mxu0 %v351_v62  ;;  %963 = vmatpush3.msra.mxu1 %v351_v62 }
  0x76   : > { %879 = vmatprep.subr.mxu0 %v350_v3  ;;  %948 = vmatprep.subr.mxu1 %v350_v3 }
  0x77   : > { %880 = vmatpush3.msra.mxu0 %v350_v3  ;;  %964 = vmatpush3.msra.mxu1 %v350_v3 }
  0x78   : > { %881 = vmatprep.subr.mxu0 %v349_v8  ;;  %949 = vmatprep.subr.mxu1 %v349_v8 }
  0x79   : > { %882 = vmatpush3.msra.mxu0 %v349_v8  ;;  %965 = vmatpush3.msra.mxu1 %v349_v8 }
  0x7a   : > { %883 = vmatprep.subr.mxu0 %v348_v11  ;;  %950 = vmatprep.subr.mxu1 %v348_v11 }
  0x7b   : > { %884 = vmatpush3.msra.mxu0 %v348_v11  ;;  %966 = vmatpush3.msra.mxu1 %v348_v11 }
  0x7c   : > { %885 = vmatprep.subr.mxu0 %v347_v14  ;;  %951 = vmatprep.subr.mxu1 %v347_v14 }
  0x7d   : > { %886 = vmatpush3.msra.mxu0 %v347_v14  ;;  %967 = vmatpush3.msra.mxu1 %v347_v14 }
  0x7e   : > { %887 = vmatprep.subr.mxu0 %v346_v15  ;;  %952 = vmatprep.subr.mxu1 %v346_v15 }
  0x7f   : > { %888 = vmatpush3.msra.mxu0 %v346_v15  ;;  %968 = vmatpush3.msra.mxu1 %v346_v15 }
  0x80   : > { %889 = vmatprep.mubr.f32.mxu0 %v362_v16  ;;  %913 = vmatprep.mubr.f32.mxu1 %v378_v17 }
  0x81   : > { %890 = vmatmul.mubr.f32.vlgmr.msra.gmra.mxu0 %v363_v18  ;;  %914 = vmatmul.mubr.f32.vlgmr.msra.gmra.mxu1 %v379_v19 }
  0x82   : > { %892 = vmatprep.mubr.f32.mxu0 %v364_v20  ;;  %916 = vmatprep.mubr.f32.mxu1 %v380_v21 }
  0x85   : > { %893 = vmatmul.mubr.f32.gmra.mxu0 %v365_v22  ;;  %917 = vmatmul.mubr.f32.gmra.mxu1 %v381_v23 }
  0x86   : > { %895 = vmatprep.mubr.f32.mxu0 %v366_v24  ;;  %919 = vmatprep.mubr.f32.mxu1 %v382_v25 }
  0x89   : > { %896 = vmatmul.mubr.f32.gmra.mxu0 %v367_v26  ;;  %920 = vmatmul.mubr.f32.gmra.mxu1 %v383_v27 }
  0x8a   : > { %898 = vmatprep.mubr.f32.mxu0 %v368_v28  ;;  %922 = vmatprep.mubr.f32.mxu1 %v384_v29 }
  0x8d   : > { %899 = vmatmul.mubr.f32.gmra.mxu0 %v369_v30  ;;  %923 = vmatmul.mubr.f32.gmra.mxu1 %v385_v31 }
  0x8e   : > { %901 = vmatprep.mubr.f32.mxu0 %v370_v32  ;;  %925 = vmatprep.mubr.f32.mxu1 %v386_v33 }
  0x91   : > { %902 = vmatmul.mubr.f32.gmra.mxu0 %v371_v34  ;;  %926 = vmatmul.mubr.f32.gmra.mxu1 %v387_v35 }
  0x92   : > { %904 = vmatprep.mubr.f32.mxu0 %v372_v36  ;;  %928 = vmatprep.mubr.f32.mxu1 %v388_v37 }
  0x95   : > { %905 = vmatmul.mubr.f32.gmra.mxu0 %v373_v38  ;;  %929 = vmatmul.mubr.f32.gmra.mxu1 %v389_v39 }
  0x96   : > { %907 = vmatprep.mubr.f32.mxu0 %v374_v40  ;;  %931 = vmatprep.mubr.f32.mxu1 %v390_v41 }
  0x99   : > { %908 = vmatmul.mubr.f32.gmra.mxu0 %v375_v42  ;;  %932 = vmatmul.mubr.f32.gmra.mxu1 %v391_v43 }
  0x9a   : > { %910 = vmatprep.mubr.f32.mxu0 %v376_v44  ;;  %934 = vmatprep.mubr.f32.mxu1 %v392_v45 }
  0x9d   : > { %911 = vmatmul.mubr.f32.gmra.mxu0 %v377_v46  ;;  %935 = vmatmul.mubr.f32.gmra.mxu1 %v393_v47 }
 0x141   : > { %v891_v48 = vpop.f32.mrf.mxu0  ;;  %v915_v49 = vpop.f32.mrf.mxu1 }
 0x142   : > { %620 = vst [vmem:[%s1510_s23 + $0x8] sm:$0xff] %v891_v48  ;;  %636 = vst [vmem:[%s1510_s23 + $0x88] sm:$0xff] %v915_v49 }
 0x143   : > { %v460_v50 = vpop.f32.mrf.mxu0  ;;  %v540_v51 = vpop.f32.mrf.mxu1 }
 0x144   : > { %619 = vst [vmem:[%s1510_s23] sm:$0xff] %v460_v50  ;;  %635 = vst [vmem:[%s1510_s23 + $0x80] sm:$0xff] %v540_v51 }
 0x145   : > { %v894_v52 = vpop.f32.mrf.mxu0  ;;  %v918_v53 = vpop.f32.mrf.mxu1 }
 0x146   : > { %622 = vst [vmem:[%s1510_s23 + $0x18] sm:$0xff] %v894_v52  ;;  %638 = vst [vmem:[%s1510_s23 + $0x98] sm:$0xff] %v918_v53 }
 0x147   : > { %v470_v54 = vpop.f32.mrf.mxu0  ;;  %v550_v55 = vpop.f32.mrf.mxu1 }
 0x148   : > { %621 = vst [vmem:[%s1510_s23 + $0x10] sm:$0xff] %v470_v54  ;;  %637 = vst [vmem:[%s1510_s23 + $0x90] sm:$0xff] %v550_v55 }
 0x149   : > { %v897_v56 = vpop.f32.mrf.mxu0  ;;  %v921_v57 = vpop.f32.mrf.mxu1 }
 0x14a   : > { %624 = vst [vmem:[%s1510_s23 + $0x28] sm:$0xff] %v897_v56  ;;  %640 = vst [vmem:[%s1510_s23 + $0xa8] sm:$0xff] %v921_v57 }
 0x14b   : > { %v480_v58 = vpop.f32.mrf.mxu0  ;;  %v560_v59 = vpop.f32.mrf.mxu1 }
 0x14c   : > { %623 = vst [vmem:[%s1510_s23 + $0x20] sm:$0xff] %v480_v58  ;;  %639 = vst [vmem:[%s1510_s23 + $0xa0] sm:$0xff] %v560_v59 }
 0x14d   : > { %v900_v60 = vpop.f32.mrf.mxu0  ;;  %v924_v61 = vpop.f32.mrf.mxu1 }
 0x14e   : > { %626 = vst [vmem:[%s1510_s23 + $0x38] sm:$0xff] %v900_v60  ;;  %642 = vst [vmem:[%s1510_s23 + $0xb8] sm:$0xff] %v924_v61 }
 0x14f   : > { %v490_v62 = vpop.f32.mrf.mxu0  ;;  %v570_v63 = vpop.f32.mrf.mxu1 }
 0x150   : > { %625 = vst [vmem:[%s1510_s23 + $0x30] sm:$0xff] %v490_v62  ;;  %641 = vst [vmem:[%s1510_s23 + $0xb0] sm:$0xff] %v570_v63 }
 0x151   : > { %v903_v0 = vpop.f32.mrf.mxu0  ;;  %v927_v1 = vpop.f32.mrf.mxu1 }
 0x152   : > { %628 = vst [vmem:[%s1510_s23 + $0x48] sm:$0xff] %v903_v0  ;;  %644 = vst [vmem:[%s1510_s23 + $0xc8] sm:$0xff] %v927_v1 }
 0x153   : > { %v500_v2 = vpop.f32.mrf.mxu0  ;;  %v580_v3 = vpop.f32.mrf.mxu1 }
 0x154   : > { %627 = vst [vmem:[%s1510_s23 + $0x40] sm:$0xff] %v500_v2  ;;  %643 = vst [vmem:[%s1510_s23 + $0xc0] sm:$0xff] %v580_v3 }
 0x155   : > { %v906_v4 = vpop.f32.mrf.mxu0  ;;  %v930_v5 = vpop.f32.mrf.mxu1 }
 0x156   : > { %630 = vst [vmem:[%s1510_s23 + $0x58] sm:$0xff] %v906_v4  ;;  %646 = vst [vmem:[%s1510_s23 + $0xd8] sm:$0xff] %v930_v5 }
 0x157   : > { %v510_v6 = vpop.f32.mrf.mxu0  ;;  %v590_v7 = vpop.f32.mrf.mxu1 }
 0x158   : > { %629 = vst [vmem:[%s1510_s23 + $0x50] sm:$0xff] %v510_v6  ;;  %645 = vst [vmem:[%s1510_s23 + $0xd0] sm:$0xff] %v590_v7 }
 0x159   : > { %v909_v8 = vpop.f32.mrf.mxu0  ;;  %v933_v9 = vpop.f32.mrf.mxu1 }
 0x15a   : > { %632 = vst [vmem:[%s1510_s23 + $0x68] sm:$0xff] %v909_v8  ;;  %648 = vst [vmem:[%s1510_s23 + $0xe8] sm:$0xff] %v933_v9 }
 0x15b   : > { %v520_v10 = vpop.f32.mrf.mxu0  ;;  %v600_v11 = vpop.f32.mrf.mxu1 }
 0x15c   : > { %631 = vst [vmem:[%s1510_s23 + $0x60] sm:$0xff] %v520_v10  ;;  %647 = vst [vmem:[%s1510_s23 + $0xe0] sm:$0xff] %v600_v11 }
 0x15d   : > { %v912_v12 = vpop.f32.mrf.mxu0  ;;  %v936_v13 = vpop.f32.mrf.mxu1 }
 0x15e   : > { %634 = vst [vmem:[%s1510_s23 + $0x78] sm:$0xff] %v912_v12  ;;  %650 = vst [vmem:[%s1510_s23 + $0xf8] sm:$0xff] %v936_v13 }
 0x15f   : > { %v530_v14 = vpop.f32.mrf.mxu0  ;;  %v610_v15 = vpop.f32.mrf.mxu1 }
 0x160   : > { %633 = vst [vmem:[%s1510_s23 + $0x70] sm:$0xff] %v530_v14  ;;  %649 = vst [vmem:[%s1510_s23 + $0xf0] sm:$0xff] %v610_v15 }
 0x161   : > { %1185 = shalt.err (!%p1182_p10)
}
 0x162   : > { %s1186_s11 = scalar_lea.hbm %s1545_s12, 4096  ;;  %s1190_s27 = scalar_lea.hbm %s1602_s4, 16384 }
 0x163   : > { %p1187_p5 = scmp.ne.s32.totalorder %s1545_s12, %s1186_s11  ;;  %p1191_p11 = scmp.lt.s32.totalorder %s1545_s12, %s1602_s4 }
 0x164   : > { %p1192_p9 = scmp.lt.s32.totalorder %s1190_s27, %s1186_s11 }
 0x165   : > { %p1188_p7 = pnand %p1187_p5, %p1616_p4 }
 0x166   : > { %p1193_p3 = por %p1192_p9, %p1191_p11 }
 0x167   : > { %p1189_p6 = pneg %p1188_p7 }
 0x169   : > { %p1194_p1 = pnand %p1193_p3, %p1189_p6 }
 0x16b   : > { %1197 = shalt.err (!%p1194_p1)
}
 0x16c   : > { %s1269_s25 = smov 128   ;;  %s1270_s29 = smov 8  }
 0x16d   : > { %983 = dma.vmem_to_hbm [thread:$0]  (%p1616_p4), %s1547_s24, 4096, %s1545_s12, %s652_s18, %s1269_s25, %s1269_s25, %s1270_s29  }
 0x16e PF: > { %p1010_p8 = scmp.ge.s32.totalorder %s1260_s20, 2  ;;  %s682_s5 = sand.u32 1, %s1240_s15  }
 0x16f   : > { %p1617_p12 = scmp.ne.s32.totalorder %s1609_s26, 0  ;;  %s683_s6 = scalar_lea.sflag [#allocation4], %s682_s5 }
 0x171   : > { %p1000_p13 = pnand %p1010_p8, %p1617_p12 }
 0x173   : > { %p1001_p0 = pneg %p1000_p13 }
 0x175   : > { %1235 = dma.done.wait (%p1001_p0), %s683_s6, 4096  }
 0x176   : > { %1237 = vsyncadd (%p1001_p0), %s683_s6, 4294963200  ;;  %s22_s20 = sadd.s32 1, %s1260_s20   ;;  %s1618_s15 = smov %s1244_s16 }
 0x177   : > { %p19_p2 = scmp.ge.s32.totalorder %s22_s20, 6   ;;  %s1619_s16 = smov %s1248_s17 }
 0x178   : > { %s1620_s17 = smov %s1416_s14  ;;  %s1621_s18 = smov %s1256_s19 }
 0x179   : > { %s1622_s19 = smov %s1624_s30  ;;  %21 = sbr.rel (!%p19_p2) target bundleno = 8 (0x8), region = 94 }
 0x17e   :  { %688 = vsyncpa [#allocation3], 1 }
 0x17f   :  { %690 = vsyncpa [#allocation3 + $0x1], 1 }
 0x180   :  { %691 = vsyncpa [#allocation6], 1 }
 0x181   :  { %692 = vsyncpa [#allocation9], 1 }
 0x182   :  { %693 = vsyncpa [#allocation4], 1 }
 0x183   :  { %695 = vsyncpa [#allocation4 + $0x1], 1 }

</bundles_post_ra>
